<compile_context>
chip_gen: v7x
topology: tpu7x:2x2x1
jax: 0.10.0
libtpu: 0.0.40
codegen_flags: <defaults>
</compile_context>

<pallas_src>
import functools

import jax
import jax.numpy as jnp
from jax.experimental import pallas as pl
from jax.experimental.pallas import tpu as pltpu

NEG_SLOPE = 0.3
BN_EPS = 1e-5
LANES = 128


def _round_up(v, m):
    return -(-v // m) * m


def _lrelu(v):
    return jnp.where(v > 0, v, NEG_SLOPE * v)


# ------------------------------ Pallas kernel --------------------------------
def sepconv_kernel(x_ref, h_ref, w_ref, b_ref, o_ref, win_ref,
                   *, n_mats, rows, halo_rows):
    """Fused depthwise+pointwise+BN+LeakyReLU over one packed row tile.

    x_ref:   (rows, 128)              bf16 main tile (packed timesteps x channels)
    h_ref:   (halo_rows, 128)         bf16 head of the NEXT tile (halo)
    w_ref:   (n_mats, 128, 128)       bf16 fused per-row-offset weights
    b_ref:   (1, 128)                 f32 fused bias (BN folded in)
    o_ref:   (rows, 128)              output tile
    win_ref: (rows + halo_rows, 128)  bf16 scratch window = tile ++ halo
    """
    # Assemble the contiguous window once (cheap VMEM-to-VMEM copy), then every
    # shifted tap is a plain sublane-offset slice of one ref.
    win_ref[pl.ds(0, rows), :] = x_ref[...]
    win_ref[pl.ds(rows, halo_rows), :] = h_ref[...]

    # Offset-0 matrix initializes the accumulator together with the bias.
    acc = jnp.dot(x_ref[...], w_ref[0],
                  preferred_element_type=jnp.float32) + b_ref[...]
    for m in range(1, n_mats):
        acc = acc + jnp.dot(win_ref[pl.ds(m, rows), :], w_ref[m],
                            preferred_element_type=jnp.float32)
    o_ref[...] = _lrelu(acc).astype(o_ref.dtype)


# --------------------------------- wrapper ------------------------------------
def separable_conv1d_forward(x_ncl, params, *, rows_per_tile=1024,
                             out_dtype=jnp.float32):
    """x_ncl: (N, C_in, L) float32 (torch Conv1d layout). Returns (N, C_out, L).

    Implements SeparableConv1d.forward with stride=1, is_padding=True, odd
    kernel_size; BatchNorm1d is applied in eval mode (running statistics).
    """
    w_dw = params["w_dw"]        # (C_in, 1, K)   depthwise, groups=C_in
    w_pw = params["w_pw"]        # (C_out, C_in, 1) pointwise 1x1
    gamma, beta = params["gamma"], params["beta"]
    mean, var = params["mean"], params["var"]

    N, C_in, L = x_ncl.shape
    C_out = w_pw.shape[0]
    K = w_dw.shape[-1]
    assert K % 2 == 1, "only odd kernel_size supported"
    assert max(C_in, C_out) <= LANES, "packed layout needs C <= 128"
    # TODO(synk): stride > 1 / is_padding=False / training-mode BN / C > 128
    # paths not implemented (module defaults: stride=1, is_padding=True).
    pad = (K - 1) // 2

    # ---- packed layout: T timesteps x C channels per 128-lane row -----------
    T = LANES // max(C_in, C_out)
    M = -(-pad // T) if pad else 0            # neighbour rows needed per side
    n_mats = 2 * M + 1
    halo_rows = max(8, _round_up(2 * M, 8))

    # ---- fold depthwise * pointwise * BN into n_mats (128,128) matrices -----
    scale = gamma / jnp.sqrt(var + BN_EPS)                     # (C_out,)
    bias = beta - mean * scale                                 # (C_out,)
    wd = w_dw[:, 0, :]                                         # (C_in, K)
    wp = w_pw[:, :, 0] * scale[:, None]                        # (C_out, C_in)
    ti = jnp.arange(T)
    to = jnp.arange(T)
    rel = jnp.arange(n_mats) - M
    # tap index for (row offset, local in-time, local out-time)
    k_idx = rel[:, None, None] * T + ti[None, :, None] - to[None, None, :] + pad
    valid = (k_idx >= 0) & (k_idx < K)
    taps = jnp.where(valid[..., None],
                     wd.T[jnp.clip(k_idx, 0, K - 1)], 0.0)     # (n_mats,T,T,C_in)
    W = jnp.einsum("mabc,oc->macbo", taps, wp)                 # (n_mats,T,C_in,T,C_out)
    W = W.reshape(n_mats, T * C_in, T * C_out)
    wf = (jnp.zeros((n_mats, LANES, LANES), jnp.float32)
          .at[:, :T * C_in, :T * C_out].set(W).astype(jnp.bfloat16))
    b_p = (jnp.zeros((1, LANES), jnp.float32)
           .at[0, :T * C_out].set(jnp.tile(bias, T)))

    # ---- pack input: (N,C,L) -> channels-last, conv-padded, T per row -------
    L_pack = _round_up(L + 2 * pad, T)
    xt = jnp.transpose(x_ncl, (0, 2, 1)).astype(jnp.bfloat16)      # (N, L, C_in)
    xt = jnp.pad(xt, ((0, 0), (pad, L_pack - L - pad), (0, 0)))    # (N, L_pack, C_in)
    rows_per_sample = L_pack // T
    R = N * rows_per_sample
    x_rows = xt.reshape(R, T * C_in)
    if T * C_in < LANES:
        x_rows = jnp.pad(x_rows, ((0, 0), (0, LANES - T * C_in)))  # (R, 128)

    # ---- tile geometry -------------------------------------------------------
    # Cap G so large problems still give >= ~8 grid steps (v7x megacore).
    G = _round_up(max(halo_rows, min(rows_per_tile, -(-R // 8))), halo_rows)
    nb = -(-R // G)
    slab_rows = nb * G + halo_rows
    # slab row = logical packed row + M  (M leading zero rows feed rel < 0).
    slab = jnp.pad(x_rows, ((M, slab_rows - R - M), (0, 0)))       # (slab_rows, 128)

    kern = functools.partial(sepconv_kernel, n_mats=n_mats, rows=G,
                             halo_rows=halo_rows)
    hb = G // halo_rows
    out_flat = pl.pallas_call(
        kern,
        out_shape=jax.ShapeDtypeStruct((nb * G, LANES), out_dtype),
        grid=(nb,),
        in_specs=[
            pl.BlockSpec((G, LANES), lambda i: (i, 0)),                 # main tile
            pl.BlockSpec((halo_rows, LANES), lambda i: ((i + 1) * hb, 0)),  # halo
            pl.BlockSpec((n_mats, LANES, LANES), lambda i: (0, 0, 0)),  # weights
            pl.BlockSpec((1, LANES), lambda i: (0, 0)),                 # bias
        ],
        out_specs=pl.BlockSpec((G, LANES), lambda i: (i, 0)),
        scratch_shapes=[pltpu.VMEM((G + halo_rows, LANES), jnp.bfloat16)],
        compiler_params=pltpu.CompilerParams(
            dimension_semantics=("parallel",)),
    )(slab, slab, wf, b_p)

    out = out_flat[:R, :T * C_out].reshape(N, L_pack, C_out)[:, pad:pad + L, :]
    return jnp.transpose(out, (0, 2, 1)).astype(out_dtype)        # (N, C_out, L)


# ----------------------------- params & reference -----------------------------
def init_params(key, c_in, c_out, k):
    k1, k2, k3, k4, k5, k6 = jax.random.split(key, 6)
    return dict(
        w_dw=0.3 * jax.random.normal(k1, (c_in, 1, k), jnp.float32),
        w_pw=0.3 * jax.random.normal(k2, (c_out, c_in, 1), jnp.float32),
        gamma=1.0 + 0.1 * jax.random.normal(k3, (c_out,), jnp.float32),
        beta=0.1 * jax.random.normal(k4, (c_out,), jnp.float32),
        mean=0.1 * jax.random.normal(k5, (c_out,), jnp.float32),
        var=jnp.abs(jax.random.normal(k6, (c_out,), jnp.float32)) + 0.5,
    )


def ref_forward(x, params):
    """Pure-JAX f32 reference on (N, C, L): depthwise -> pointwise -> BN -> LReLU."""
    w_dw, w_pw = params["w_dw"], params["w_pw"]
    gamma, beta = params["gamma"], params["beta"]
    mean, var = params["mean"], params["var"]
    N, C, L = x.shape
    K = w_dw.shape[-1]
    pad = (K - 1) // 2
    xp = jnp.pad(x, ((0, 0), (0, 0), (pad, pad)))
    y = sum(w_dw[None, :, 0, k, None] * xp[:, :, k:k + L] for k in range(K))
    z = jnp.einsum("oc,ncl->nol", w_pw[:, :, 0], y)
    scale = gamma / jnp.sqrt(var + BN_EPS)
    z = z * scale[None, :, None] + (beta - mean * scale)[None, :, None]
    return jnp.where(z > 0, z, NEG_SLOPE * z)


# ------------------------------------ main -------------------------------------
if __name__ == "__main__":
    key = jax.random.PRNGKey(0)
    configs = [
        dict(N=8, C_IN=8, C_OUT=8, L=30, K=3),     # T=16, full 128 lanes used
        dict(N=3, C_IN=6, C_OUT=10, L=20, K=5),    # C_in != C_out, partial lanes
    ]
    for cfg in configs:
        kx, kp, key = jax.random.split(key, 3)
        x = jax.random.normal(kx, (cfg["N"], cfg["C_IN"], cfg["L"]), jnp.float32)
        params = init_params(kp, cfg["C_IN"], cfg["C_OUT"], cfg["K"])

        out = jax.block_until_ready(separable_conv1d_forward(x, params))
        ref = ref_forward(x, params)
        assert out.shape == ref.shape, (out.shape, ref.shape)
        # Tolerance accounts for bf16 quantization of inputs/fused weights.
        max_err = float(jnp.max(jnp.abs(out - ref)))
        assert jnp.allclose(out, ref, atol=5e-2, rtol=5e-2), max_err
    print("KERNEL_OK")
</pallas_src>

<mosaic_0001>
module attributes {stable_mosaic.version = 11 : i64} {
  func.func @sepconv_kernel(%arg0: i32, %arg1: memref<8x128xbf16, #tpu.memory_space<vmem>>, %arg2: memref<8x128xbf16, #tpu.memory_space<vmem>>, %arg3: memref<3x128x128xbf16, #tpu.memory_space<vmem>>, %arg4: memref<1x128xf32, #tpu.memory_space<vmem>>, %arg5: memref<8x128xf32, #tpu.memory_space<vmem>>, %arg6: memref<16x128xbf16, #tpu.memory_space<vmem>>) attributes {dimension_semantics = [#tpu.dimension_semantics<parallel>], iteration_bounds = array<i64: 2>, scalar_prefetch = 0 : i64, scratch_operands = 1 : i64, tpu.core_type = #tpu.core_type<tc>, window_params = [{transform_indices = @transform_0, window_bounds = array<i64: 8, 128>}, {transform_indices = @transform_1, window_bounds = array<i64: 8, 128>}, {pipeline_mode = #tpu.pipeline_mode<synchronous>, transform_indices = @transform_2, window_bounds = array<i64: 3, 128, 128>}, {pipeline_mode = #tpu.pipeline_mode<synchronous>, transform_indices = @transform_3, window_bounds = array<i64: 1, 128>}, {transform_indices = @transform_4, window_bounds = array<i64: 8, 128>}]} {
    %c0 = arith.constant 0 : index
    %c0_0 = arith.constant 0 : index
    %0 = vector.load %arg1[%c0, %c0_0] : memref<8x128xbf16, #tpu.memory_space<vmem>>, vector<8x128xbf16>
    %c0_1 = arith.constant 0 : index
    %c0_2 = arith.constant 0 : index
    %1 = vector.load %arg6[%c0_1, %c0_2] : memref<16x128xbf16, #tpu.memory_space<vmem>>, vector<8x128xbf16>
    tpu.vector_store %arg6[%c0_1, %c0_2], %0 {strides = array<i32>} : memref<16x128xbf16, #tpu.memory_space<vmem>>, vector<8x128xbf16>,
    %c0_3 = arith.constant 0 : index
    %c0_4 = arith.constant 0 : index
    %2 = vector.load %arg2[%c0_3, %c0_4] : memref<8x128xbf16, #tpu.memory_space<vmem>>, vector<8x128xbf16>
    %c8 = arith.constant 8 : index
    %c0_5 = arith.constant 0 : index
    %3 = vector.load %arg6[%c8, %c0_5] : memref<16x128xbf16, #tpu.memory_space<vmem>>, vector<8x128xbf16>
    tpu.vector_store %arg6[%c8, %c0_5], %2 {strides = array<i32>} : memref<16x128xbf16, #tpu.memory_space<vmem>>, vector<8x128xbf16>,
    %c0_6 = arith.constant 0 : index
    %c0_7 = arith.constant 0 : index
    %4 = vector.load %arg1[%c0_6, %c0_7] : memref<8x128xbf16, #tpu.memory_space<vmem>>, vector<8x128xbf16>
    %c0_8 = arith.constant 0 : index
    %c0_9 = arith.constant 0 : index
    %c0_10 = arith.constant 0 : index
    %5 = vector.load %arg3[%c0_8, %c0_9, %c0_10] : memref<3x128x128xbf16, #tpu.memory_space<vmem>>, vector<1x128x128xbf16>
    %6 = vector.shape_cast %5 : vector<1x128x128xbf16> to vector<128x128xbf16>
    %cst = arith.constant dense<0.000000e+00> : vector<8x128xf32>
    %7 = tpu.matmul %4, %6, %cst {dimension_numbers = #tpu.dot_dimension_numbers<[1], [0], [0], [1], [0, 0, 1, 1], [], []>} : vector<8x128xbf16>, vector<128x128xbf16>, vector<8x128xf32> -> vector<8x128xf32>
    %c0_11 = arith.constant 0 : index
    %c0_12 = arith.constant 0 : index
    %8 = vector.load %arg4[%c0_11, %c0_12] : memref<1x128xf32, #tpu.memory_space<vmem>>, vector<1x128xf32>
    %9 = vector.broadcast %8 : vector<1x128xf32> to vector<8x128xf32>
    %10 = arith.addf %7, %9 : vector<8x128xf32>
    %c1 = arith.constant 1 : index
    %c0_13 = arith.constant 0 : index
    %11 = vector.load %arg6[%c1, %c0_13] : memref<16x128xbf16, #tpu.memory_space<vmem>>, vector<8x128xbf16>
    %c1_14 = arith.constant 1 : index
    %c0_15 = arith.constant 0 : index
    %c0_16 = arith.constant 0 : index
    %12 = vector.load %arg3[%c1_14, %c0_15, %c0_16] : memref<3x128x128xbf16, #tpu.memory_space<vmem>>, vector<1x128x128xbf16>
    %13 = vector.shape_cast %12 : vector<1x128x128xbf16> to vector<128x128xbf16>
    %cst_17 = arith.constant dense<0.000000e+00> : vector<8x128xf32>
    %14 = tpu.matmul %11, %13, %cst_17 {dimension_numbers = #tpu.dot_dimension_numbers<[1], [0], [0], [1], [0, 0, 1, 1], [], []>} : vector<8x128xbf16>, vector<128x128xbf16>, vector<8x128xf32> -> vector<8x128xf32>
    %15 = arith.addf %10, %14 : vector<8x128xf32>
    %c2 = arith.constant 2 : index
    %c0_18 = arith.constant 0 : index
    %16 = vector.load %arg6[%c2, %c0_18] : memref<16x128xbf16, #tpu.memory_space<vmem>>, vector<8x128xbf16>
    %c2_19 = arith.constant 2 : index
    %c0_20 = arith.constant 0 : index
    %c0_21 = arith.constant 0 : index
    %17 = vector.load %arg3[%c2_19, %c0_20, %c0_21] : memref<3x128x128xbf16, #tpu.memory_space<vmem>>, vector<1x128x128xbf16>
    %18 = vector.shape_cast %17 : vector<1x128x128xbf16> to vector<128x128xbf16>
    %cst_22 = arith.constant dense<0.000000e+00> : vector<8x128xf32>
    %19 = tpu.matmul %16, %18, %cst_22 {dimension_numbers = #tpu.dot_dimension_numbers<[1], [0], [0], [1], [0, 0, 1, 1], [], []>} : vector<8x128xbf16>, vector<128x128xbf16>, vector<8x128xf32> -> vector<8x128xf32>
    %20 = arith.addf %15, %19 : vector<8x128xf32>
    %cst_23 = arith.constant 0.000000e+00 : f32
    %21 = vector.broadcast %cst_23 : f32 to vector<8x128xf32>
    %22 = arith.cmpf ogt, %20, %21 : vector<8x128xf32>
    %cst_24 = arith.constant 3.000000e-01 : f32
    %23 = vector.broadcast %cst_24 : f32 to vector<8x128xf32>
    %24 = arith.mulf %23, %20 : vector<8x128xf32>
    %25 = arith.select %22, %20, %24 : vector<8x128xi1>, vector<8x128xf32>
    %c0_25 = arith.constant 0 : index
    %c0_26 = arith.constant 0 : index
    %26 = vector.load %arg5[%c0_25, %c0_26] : memref<8x128xf32, #tpu.memory_space<vmem>>, vector<8x128xf32>
    tpu.vector_store %arg5[%c0_25, %c0_26], %25 {strides = array<i32>} : memref<8x128xf32, #tpu.memory_space<vmem>>, vector<8x128xf32>,
    return
  }
  func.func @transform_0(%arg0: i32) -> (i32, i32) {
    %c0_i32 = arith.constant 0 : i32
    %c0_i32_0 = arith.constant 0 : i32
    return %arg0, %c0_i32 : i32, i32
  }
  func.func @transform_1(%arg0: i32) -> (i32, i32) {
    %c1_i32 = arith.constant 1 : i32
    %0 = arith.addi %arg0, %c1_i32 : i32
    %c1_i32_0 = arith.constant 1 : i32
    %1 = arith.muli %0, %c1_i32_0 : i32
    %c0_i32 = arith.constant 0 : i32
    %c0_i32_1 = arith.constant 0 : i32
    return %1, %c0_i32 : i32, i32
  }
  func.func @transform_2(%arg0: i32) -> (i32, i32, i32) {
    %c0_i32 = arith.constant 0 : i32
    %c0_i32_0 = arith.constant 0 : i32
    %c0_i32_1 = arith.constant 0 : i32
    %c0_i32_2 = arith.constant 0 : i32
    return %c0_i32, %c0_i32_0, %c0_i32_1 : i32, i32, i32
  }
  func.func @transform_3(%arg0: i32) -> (i32, i32) {
    %c0_i32 = arith.constant 0 : i32
    %c0_i32_0 = arith.constant 0 : i32
    %c0_i32_1 = arith.constant 0 : i32
    return %c0_i32, %c0_i32_0 : i32, i32
  }
  func.func @transform_4(%arg0: i32) -> (i32, i32) {
    %c0_i32 = arith.constant 0 : i32
    %c0_i32_0 = arith.constant 0 : i32
    return %arg0, %c0_i32 : i32, i32
  }
}

</mosaic_0001>

<bundles_post_ra>
// kernel: tpu_custom_call.1
= control target key start
LH: loop header
LB: loop body
LE: loop exit
PB: predicated region body
PF: predicated region fallthrough
CT: control target
= control target key end

     0   :  { %s1530_s0 = inlined_call_operand.hbm [shape: bf16[24,128], index: 0, kind: input, shape index: {}]   ;;  %s1531_s1 = inlined_call_operand.hbm [shape: bf16[24,128], index: 1, kind: input, shape index: {}]   ;;  %s1532_s2 = inlined_call_operand.hbm [shape: bf16[3,128,128], index: 2, kind: input, shape index: {}]   ;;  %s1533_s3 = inlined_call_operand.vmem [shape: f32[1,128], index: 3, kind: input, shape index: {}]   ;;  %s1534_s4 = inlined_call_operand.hbm [shape: f32[16,128], index: 4, kind: output, shape index: {}]  }
   0x1   :  { %1542 = sst [smem:[#allocation16_spill]] %s1532_s2 }
   0x2   :  { %9 = vsyncpa [#allocation4], 0 }
   0x3   :  { %11 = vsyncpa [#allocation4 + $0x1], 0 }
   0x4   :  { %12 = vsyncpa [#allocation7], 0 }
   0x5   :  { %14 = vsyncpa [#allocation7 + $0x1], 0 }
   0x6   :  { %15 = vsyncpa [#allocation5], 0 }
   0x7   :  { %17 = vsyncpa [#allocation5 + $0x1], 0  ;;  %s1208_s15 = smov 0   ;;  %s1210_s16 = smov 0  }
   0x8   :  { %s1212_s17 = smov 0   ;;  %s1214_s18 = smov 0  }
   0x9   :  { %s1216_s19 = smov 0   ;;  %s1218_s20 = smov 0  }
   0xa   :  { %s1220_s21 = smov 0  }
   0xb LB: > { %1543 = sst [smem:[#allocation14_spill]] %s1169_s20  ;;  %s1175_s22 = smov [#allocation8]   ;;  %s1173_s21 = sphi %s1220_s21, %s1572_s21   ;;  %s1169_s20 = sphi %s1218_s20, %s1566_s20   ;;  %s1165_s19 = sphi %s1216_s19, %s1571_s19   ;;  %s1161_s18 = sphi %s1214_s18, %s1570_s18   ;;  %s1157_s17 = sphi %s1212_s17, %s1569_s17   ;;  %s1153_s16 = sphi %s1210_s16, %s1568_s16   ;;  %s1149_s15 = sphi %s1208_s15, %s1567_s15  }
   0xc   : > { %s162_s23 = sshll.u32 %s1175_s22, 4  ;;  %s1244_s24 = sadd.s32 4294967295, %s1173_s21   ;;  %s163_s23 = int_to_ptr.vmem [resolvable:$true] %s162_s23 }
   0xd   : > { %p736_p0 = scmp.ge.s32.totalorder %s1173_s21, 1  ;;  %p1535_p1 = scmp.eq.s32.totalorder %s1244_s24, 0 }
   0xe   : > { %p150_p2 = scmp.lt.s32.totalorder %s1173_s21, 3  ;;  %s735_s27 = sadd.s32 4294967294, %s1173_s21  }
   0xf   : > { %s1546_s2 = sld [smem:[#allocation16_spill]] }
  0x10   : > { %p1249_p3 = pnand %p736_p0, %p150_p2 }
  0x12   : > { %s1544_s25 = scalar_select %p1249_p3, 1, 0 }
  0x13   : > { %p881_p5 = pneg %p1249_p3 }
  0x15   : > { %p1258_p6 = pnand %p881_p5, %p1535_p1  ;;  %s986_s30 = scalar_lea.hbm %s1546_s2, 3072 }
  0x16   : > { %p987_p7 = scmp.ne.s32.totalorder %s1546_s2, %s986_s30  ;;  %p993_p11 = scmp.lt.u32.totalorder %s986_s30, %s1546_s2 }
  0x17   : > { %p988_p8 = pneg %p1258_p6 }
  0x19   : > { %p989_p9 = pnand %p988_p8, %p987_p7 }
  0x1b   : > { %p990_p10 = pneg %p989_p9 }
  0x1d   : > { %p995_p12 = pnand %p993_p11, %p990_p10 }
  0x1f   : > { %998 = shalt.err (!%p995_p12)
}
  0x20   : > { %s999_s9 = scalar_lea.vmem %s163_s23, 3072  ;;  %p1007_p5 = scmp.lt.s32.totalorder %s163_s23, %s163_s23 }
  0x21   : > { %p1000_p13 = scmp.ne.s32.totalorder %s163_s23, %s999_s9  ;;  %p1008_p4 = scmp.lt.s32.totalorder %s999_s9, %s999_s9 }
  0x23   : > { %p1002_p0 = pnand %p1000_p13, %p988_p8  ;;  %p1009_p1 = por %p1008_p4, %p1007_p5 }
  0x25   : > { %p1003_p2 = pneg %p1002_p0 }
  0x27   : > { %p1010_p3 = pnand %p1009_p1, %p1003_p2 }
  0x29   : > { %1013 = shalt.err (!%p1010_p3)
}
  0x2a   : > { %s1176_s10 = smov 64   ;;  %s1177_s11 = smov 4  }
  0x2b   : > { %884 = dma.hbm_to_vmem [thread:$0]  (!%p1258_p6), %s1546_s2, 3072, %s163_s23, [#allocation7], %s1176_s10, %s1176_s10, %s1177_s11  }
  0x2c   : > { %s1280_s14 = sadd.s32 1, %s1173_s21   ;;  %s30_s22 = sadd.s32 1, %s1169_s20 }
  0x2d   : > { %s27_s28 = ssub.s32 %s1173_s21, %s1280_s14  ;;  %p37_p1 = scmp.ne.s32.totalorder %s1169_s20, %s1165_s19 }
  0x2e   : > { %p28_p3 = scmp.eq.s32.totalorder %s27_s28, 0  ;;  %p1539_p4 = scmp.eq.s32.totalorder %s1173_s21, 0 }
  0x2f   : > { %p43_p7 = scmp.ne.s32.totalorder %s1165_s19, %s1161_s18  ;;  %p137_p8 = scmp.eq.s32.totalorder %s1244_s24, 1 }
  0x30   : > { %s1292_s29 = scalar_select %p28_p3, %s1169_s20, %s30_s22  }
  0x31   : > { %p39_p9 = por %p1539_p4, %p37_p1  ;;  %p1548_p10 = scmp.eq.s32.totalorder %s1244_s24, 0 }
  0x32   : > { %1547 = sst [smem:[#allocation15_spill]] %s1292_s29  ;;  %p1302_p6 = por %p137_p8, %p37_p1 }
  0x33   : > { %p1298_p11 = por %p1548_p10, %p43_p7  ;;  %p143_p12 = scmp.eq.s32.totalorder %s735_s27, 1 }
  0x34   : > { %s1550_s23 = scalar_select %p1302_p6, 1, 0 }
  0x35   : > { %p1538_p13 = scmp.lt.s32.totalorder %s1173_s21, 2  ;;  %s179_s30 = sand.u32 1, %s1169_s20  }
  0x36   : > { %p1310_p0 = por %p143_p12, %p43_p7  ;;  %s739_s6 = sshll.u32 %s179_s30, 2 }
  0x37   : > { %s740_s7 = sshll.u32 %s1173_s21, 6  ;;  %s183_s11 = scalar_lea.vmem [#allocation3], %s739_s6 }
  0x38   : > { %s1551_s5 = scalar_select %p1310_p0, 1, 0 }
  0x39   : > { %s1318_s10 = scalar_lea.hbm %s1530_s0, %s740_s7  ;;  %s190_s12 = sshll.u32 %s183_s11, 4  ;;  %s1326_s12 = int_to_ptr.vmem [resolvable:$true] %s190_s12 }
  0x3a   : > { %p1322_p2 = pnand %p1538_p13, %p39_p9  ;;  %s1331_s28 = scalar_lea.hbm %s1531_s1, %s740_s7 }
  0x3b   : > { %s180_s8 = scalar_lea.sflag [#allocation4], %s179_s30  ;;  %s1014_s9 = scalar_lea.hbm %s1318_s10, 64 }
  0x3c   : > { %p1015_p5 = scmp.ne.s32.totalorder %s1318_s10, %s1014_s9  ;;  %p1016_p1 = pneg %p1322_p2 }
  0x3d   : > { %s1019_s2 = scalar_lea.hbm %s1530_s0, 192  ;;  %p1020_p8 = scmp.lt.u32.totalorder %s1318_s10, %s1530_s0 }
  0x3e   : > { %p1017_p3 = pnand %p1016_p1, %p1015_p5  ;;  %p1021_p9 = scmp.lt.u32.totalorder %s1019_s2, %s1014_s9 }
  0x3f   : > { %p1023_p12 = scmp.lt.u32.totalorder %s1014_s9, %s1318_s10 }
  0x40   : > { %p1018_p7 = pneg %p1017_p3  ;;  %p1022_p10 = por %p1021_p9, %p1020_p8 }
  0x42   : > { %p1024_p13 = por %p1023_p12, %p1022_p10 }
  0x44   : > { %p1025_p4 = pnand %p1024_p13, %p1018_p7 }
  0x46   : > { %1028 = shalt.err (!%p1025_p4)
}
  0x47   : > { %s1029_s30 = scalar_lea.vmem %s1326_s12, 64  ;;  %s1178_s7 = smov [#allocation3]  }
  0x48   : > { %p1030_p5 = scmp.ne.s32.totalorder %s1326_s12, %s1029_s30  ;;  %s1034_s13 = sshll.u32 %s1178_s7, 4  ;;  %s1035_s13 = int_to_ptr.vmem [resolvable:$false] %s1034_s13 }
  0x49   : > { %s1036_s20 = scalar_lea.vmem %s1035_s13, 128  ;;  %p1037_p6 = scmp.lt.s32.totalorder %s1326_s12, %s1035_s13 }
  0x4a   : > { %p1032_p3 = pnand %p1030_p5, %p1016_p1  ;;  %p1038_p8 = scmp.lt.s32.totalorder %s1036_s20, %s1029_s30 }
  0x4c   : > { %p1033_p0 = pneg %p1032_p3  ;;  %p1039_p9 = por %p1038_p8, %p1037_p6 }
  0x4e   : > { %p1040_p10 = pnand %p1039_p9, %p1033_p0 }
  0x50   : > { %1043 = shalt.err (!%p1040_p10)
}
  0x51   : > { %888 = dma.hbm_to_vmem [thread:$0]  (!%p1322_p2), %s1318_s10, 64, %s1326_s12, %s180_s8  }
  0x52   : > { %s54_s2 = sadd.s32 1, %s1280_s14  ;;  %s58_s27 = sadd.s32 1, %s1157_s17 }
  0x53   : > { %s55_s29 = ssub.s32 %s1280_s14, %s54_s2  ;;  %p65_p6 = scmp.ne.s32.totalorder %s1157_s17, %s1153_s16 }
  0x54   : > { %p56_p4 = scmp.eq.s32.totalorder %s55_s29, 0  ;;  %p71_p13 = scmp.ne.s32.totalorder %s1153_s16, %s1149_s15 }
  0x55   : > { %s197_s22 = sand.u32 1, %s1173_s21   ;;  %p1553_p0 = scmp.eq.s32.totalorder %s1173_s21, 0 }
  0x56   : > { %s1367_s9 = scalar_select %p56_p4, %s1157_s17, %s58_s27  }
  0x57   : > { %p67_p1 = por %p65_p6, %p1553_p0  ;;  %p1554_p7 = scmp.eq.s32.totalorder %s1244_s24, 0 }
  0x58   : > { %s199_s11 = sand.u32 1, %s1157_s17   ;;  %s1379_s10 = scalar_lea.hbm %s1331_s28, 64 }
  0x59   : > { %p1373_p12 = por %p71_p13, %p1554_p7  ;;  %s741_s30 = sshll.u32 %s199_s11, 2 }
  0x5a   : > { %p1556_p2 = scmp.lt.s32.totalorder %s1173_s21, 2  ;;  %s201_s12 = scalar_lea.vmem [#allocation6], %s741_s30 }
  0x5b   : > { %s1555_s6 = scalar_select %p1373_p12, 1, 0 }
  0x5c   : > { %p1383_p5 = pnand %p1556_p2, %p67_p1  ;;  %s209_s8 = sshll.u32 %s201_s12, 4  ;;  %s1387_s8 = int_to_ptr.vmem [resolvable:$true] %s209_s8 }
  0x5d   : > { %s198_s7 = scalar_lea.sflag [#allocation7], %s197_s22  ;;  %s1074_s13 = scalar_lea.hbm %s1331_s28, 128 }
  0x5e   : > { %p1045_p3 = scmp.ne.s32.totalorder %s1379_s10, %s1074_s13  ;;  %p1046_p8 = pneg %p1383_p5 }
  0x5f   : > { %s1049_s29 = scalar_lea.hbm %s1531_s1, 192  ;;  %p1050_p4 = scmp.lt.u32.totalorder %s1379_s10, %s1531_s1 }
  0x60   : > { %p1047_p9 = pnand %p1046_p8, %p1045_p3  ;;  %p1051_p6 = scmp.lt.u32.totalorder %s1049_s29, %s1074_s13 }
  0x61   : > { %p1053_p0 = scmp.lt.u32.totalorder %s1074_s13, %s1379_s10 }
  0x62   : > { %p1048_p10 = pneg %p1047_p9  ;;  %p1052_p13 = por %p1051_p6, %p1050_p4 }
  0x64   : > { %p1054_p1 = por %p1053_p0, %p1052_p13 }
  0x66   : > { %p1055_p7 = pnand %p1054_p1, %p1048_p10 }
  0x68   : > { %1058 = shalt.err (!%p1055_p7)
}
  0x69   : > { %s1059_s28 = scalar_lea.vmem %s1387_s8, 64  ;;  %s1179_s22 = smov [#allocation6]  }
  0x6a   : > { %p1060_p2 = scmp.ne.s32.totalorder %s1387_s8, %s1059_s28  ;;  %s1064_s30 = sshll.u32 %s1179_s22, 4  ;;  %s1065_s30 = int_to_ptr.vmem [resolvable:$false] %s1064_s30 }
  0x6b   : > { %s1066_s12 = scalar_lea.vmem %s1065_s30, 128  ;;  %p1067_p12 = scmp.lt.s32.totalorder %s1387_s8, %s1065_s30 }
  0x6c   : > { %p1062_p3 = pnand %p1060_p2, %p1046_p8  ;;  %p1068_p4 = scmp.lt.s32.totalorder %s1066_s12, %s1059_s28 }
  0x6e   : > { %p1063_p9 = pneg %p1062_p3  ;;  %p1069_p6 = por %p1068_p4, %p1067_p12 }
  0x70   : > { %p1070_p13 = pnand %p1069_p6, %p1063_p9 }
  0x72   : > { %1073 = shalt.err (!%p1070_p13)
}
  0x73   : > { %891 = dma.hbm_to_vmem [thread:$0]  (!%p1383_p5), %s1379_s10, 64, %s1387_s8, %s198_s7  }
  0x74   : > { %p1558_p10 = scmp.ne.s32.totalorder %s1544_s25, 0 }
  0x75   : > { %s1417_s13 = sand.u32 (!%p1558_p10), 1, %s1165_s19  }
  0x76   : > { %218 = sbr.rel (%p1558_p10) target bundleno = 431 (0x1af), region = 36  ;;  %s744_s20 = sshll.u32 (!%p1558_p10), %s1417_s13, 2 }
  0x77   : > { %s221_s2 = scalar_lea.sflag (!%p1558_p10), [#allocation4], %s1417_s13  ;;  %s1421_s29 = scalar_lea.vmem (!%p1558_p10), [#allocation3], %s744_s20 }
  0x7d   : > { %1132 = dma.done.wait (%p1298_p11), %s221_s2, 64  }
  0x7e   : > { %1134 = vsyncadd (%p1298_p11), %s221_s2, 4294967232  ;;  %s229_s25 = sand.u32 1, %s1244_s24   ;;  %s231_s10 = sand.u32 1, %s1153_s16  }
  0x7f   : > { %s745_s15 = sshll.u32 %s231_s10, 2  ;;  %s230_s8 = scalar_lea.sflag [#allocation7], %s229_s25 }
  0x80   : > { %s233_s7 = scalar_lea.vmem [#allocation6], %s745_s15  ;;  %p1559_p12 = scmp.ne.s32.totalorder %s1555_s6, 0 }
  0x82   : > { %1136 = dma.done.wait (%p1559_p12), %s230_s8, 64  }
  0x83   : > { %1138 = vsyncadd (%p1559_p12), %s230_s8, 4294967232  ;;  %p1560_p5 = scmp.eq.s32.totalorder %s1244_s24, 0 }
  0x85   : > { %1140 = dma.done.wait (%p1560_p5), [#allocation7], 3072   ;;  %p1561_p8 = pmov %p1560_p5 }
  0x86   : > { %v1180_v0 = vmov 0.0   ;;  %vm1181_vm0 = vmmov 0   ;;  %v961_v1 = vld [vmem:[#allocation8 + $0x40] sm:$0xff]   ;;  %v962_v2 = vld [vmem:[#allocation8 + $0x48] sm:$0xff]   ;;  %v963_v3 = vld [vmem:[#allocation8 + $0x50] sm:$0xff]   ;;  %s747_s27 = sshll.u32 %s1417_s13, 3 }
  0x87   : > { %1142 = vsyncadd (%p1561_p8), [#allocation7], 4294964224  ;;  %825 = vmatprep.subr.bf16.mxu0 %v1180_v0  ;;  %805 = vmatprep.subr.bf16.mxu1 %v1180_v0  ;;  %v968_v4 = vld [vmem:[#allocation8] sm:$0xff]   ;;  %v964_v5 = vld [vmem:[#allocation8 + $0x58] sm:$0xff]   ;;  %s775_s11 = sshll.u32 %s1244_s24, 7  ;;  %s266_s28 = scalar_lea.vmem [#allocation9], %s747_s27 }
  0x88   : > { %841 = vmatprep.mubr.msk.bf16.mxu0 %vm1181_vm0, %v1180_v0  ;;  %821 = vmatprep.mubr.msk.bf16.mxu1 %vm1181_vm0, %v1180_v0  ;;  %v970_v6 = vld [vmem:[#allocation8 + $0x8] sm:$0xff]   ;;  %v269_v7 = vld [vmem:[%s1421_s29] sm:$0xf]  ;;  %v971_v8 = vld [vmem:[%s233_s7] ss:$0 sps:$4 sm:$0xff]   ;;  %s632_s22 = sshll.u32 %s266_s28, 4  ;;  %s1477_s20 = scalar_lea.hbm %s1534_s4, %s775_s11  ;;  %s1479_s22 = int_to_ptr.vmem [resolvable:$true] %s632_s22 }
  0x89   : > { %826 = vmatpush3.bf16.msra.mxu0 %v961_v1  ;;  %806 = vmatpush3.bf16.msra.mxu1 %v968_v4  ;;  %270 = vst [vmem:[#allocation2] sm:$0xf] %v269_v7  ;;  %276 = vst [vmem:[#allocation2] sm:$0xf0] %v971_v8  ;;  %v973_v9 = vld [vmem:[#allocation8 + $0x10] sm:$0xff]   ;;  %v965_v10 = vld [vmem:[#allocation8 + $0x60] sm:$0xff]  }
  0x8a   : > { %827 = vmatprep.subr.bf16.mxu0 %v1180_v0  ;;  %807 = vmatprep.subr.bf16.mxu1 %v1180_v0  ;;  %v975_v11 = vld [vmem:[#allocation8 + $0x18] sm:$0xff]   ;;  %v966_v12 = vld [vmem:[#allocation8 + $0x68] sm:$0xff]   ;;  %v977_v15 = vld [vmem:[#allocation8 + $0x20] sm:$0xff]   ;;  %s619_s2 = scalar_lea.sflag [#allocation5], %s1417_s13  ;;  %s1075_s24 = scalar_lea.vmem %s1479_s22, 128 }
  0x8b   : > { %v967_v16 = vld [vmem:[#allocation8 + $0x70] sm:$0xff]   ;;  %v979_v19 = vld [vmem:[#allocation8 + $0x28] sm:$0xff]   ;;  %v969_v20 = vld [vmem:[#allocation8 + $0x78] sm:$0xff]   ;;  %p1076_p11 = scmp.ne.s32.totalorder %s1479_s22, %s1075_s24  ;;  %p1562_p0 = scmp.ne.s32.totalorder %s1550_s23, 0 }
  0x8c   : > { %v981_v22 = vld [vmem:[#allocation8 + $0x30] sm:$0xff]   ;;  %v972_v23 = vld [vmem:[#allocation8 + $0x80] sm:$0xff]   ;;  %v983_v24 = vld [vmem:[#allocation8 + $0x38] sm:$0xff]  }
  0x8d   : > { %828 = vmatpush3.bf16.msra.mxu0 %v962_v2  ;;  %808 = vmatpush3.bf16.msra.mxu1 %v970_v6  ;;  %v974_v25 = vld [vmem:[#allocation8 + $0x88] sm:$0xff]   ;;  %v277_v26 = vld [vmem:[%s1421_s29] sm:$0xf]  ;;  %v978_v28 = vld [vmem:[#allocation8 + $0x98] sm:$0xff]   ;;  %p1077_p1 = pnand %p1076_p11, %p1562_p0  ;;  %s1182_s29 = smov [#allocation9]  }
  0x8e   : > { %829 = vmatprep.subr.bf16.mxu0 %v1180_v0  ;;  %809 = vmatprep.subr.bf16.mxu1 %v1180_v0  ;;  %v976_v27 = vld [vmem:[#allocation8 + $0x90] sm:$0xff]   ;;  %v980_v29 = vld [vmem:[#allocation8 + $0xa0] sm:$0xff]   ;;  %v982_v30 = vld [vmem:[#allocation8 + $0xa8] sm:$0xff]   ;;  %s1079_s25 = sshll.u32 %s1182_s29, 4  ;;  %s1080_s25 = int_to_ptr.vmem [resolvable:$false] %s1079_s25 }
  0x8f   : > { %v984_v31 = vld [vmem:[#allocation8 + $0xb0] sm:$0xff]   ;;  %v985_v32 = vld [vmem:[#allocation8 + $0xb8] sm:$0xff]   ;;  %v749_v39 = vld [vmem:[%s1533_s3] ss:$0 sm:$0xff]  ;;  %p1078_p7 = pneg %p1077_p1  ;;  %s1081_s10 = scalar_lea.vmem %s1080_s25, 256 }
  0x90   : > { %v389_v13 = vld [vmem:[#allocation2] sm:$0x1f]  ;;  %p1082_p2 = scmp.lt.s32.totalorder %s1479_s22, %s1080_s25  ;;  %p1083_p3 = scmp.lt.s32.totalorder %s1081_s10, %s1075_s24 }
  0x91   : > { %830 = vmatpush3.bf16.msra.mxu0 %v963_v3  ;;  %810 = vmatpush3.bf16.msra.mxu1 %v973_v9  ;;  %v410_v14 = vshll.u32 %v389_v13, 16  ;;  %v408_v17 = vshrl.u32 %v389_v13, 16  ;;  %v504_v33 = vld [vmem:[#allocation2] sm:$0x1e] }
  0x92   : > { %831 = vmatprep.subr.bf16.mxu0 %v1180_v0  ;;  %811 = vmatprep.subr.bf16.mxu1 %v1180_v0  ;;  %v523_v34 = vrot.slane %v504_v33, 1  ;;  %p1084_p9 = por %p1083_p3, %p1082_p2 }
  0x93   : > { %v412_v18 = vrot.slane %v410_v14, 1 }
  0x94   : > { %p1085_p4 = pnand %p1084_p9, %p1078_p7 }
  0x95   : > { %832 = vmatpush3.bf16.msra.mxu0 %v964_v5  ;;  %812 = vmatpush3.bf16.msra.mxu1 %v975_v11  ;;  %v413_v21 = vor.u32 %v412_v18, %v408_v17 }
  0x96   : > { %833 = vmatprep.subr.bf16.mxu0 %v1180_v0  ;;  %813 = vmatprep.subr.bf16.mxu1 %v1180_v0 }
  0x99   : > { %834 = vmatpush3.bf16.msra.mxu0 %v965_v10  ;;  %814 = vmatpush3.bf16.msra.mxu1 %v977_v15 }
  0x9a   : > { %835 = vmatprep.subr.bf16.mxu0 %v1180_v0  ;;  %815 = vmatprep.subr.bf16.mxu1 %v1180_v0 }
  0x9d   : > { %836 = vmatpush3.bf16.msra.mxu0 %v966_v12  ;;  %816 = vmatpush3.bf16.msra.mxu1 %v979_v19 }
  0x9e   : > { %837 = vmatprep.subr.bf16.mxu0 %v1180_v0  ;;  %817 = vmatprep.subr.bf16.mxu1 %v1180_v0 }
  0xa1   : > { %838 = vmatpush3.bf16.msra.mxu0 %v967_v16  ;;  %818 = vmatpush3.bf16.msra.mxu1 %v981_v22 }
  0xa2   : > { %839 = vmatprep.subr.bf16.mxu0 %v1180_v0  ;;  %819 = vmatprep.subr.bf16.mxu1 %v1180_v0 }
  0xa5   : > { %840 = vmatpush3.bf16.msra.mxu0 %v969_v20  ;;  %820 = vmatpush3.bf16.msra.mxu1 %v983_v24 }
  0xa6   : > { %845 = vmatprep.subr.bf16.mxu0 %v1180_v0 }
  0xa8   : > { %842 = vmatmul.mubr.bf16.vlgmr.msra.gmra.mrb[0].mxu0 %v413_v21  ;;  %822 = vmatmul.mubr.bf16.vlgmr.msra.gmra.mrb[0].mxu1 %v277_v26 }
  0xa9   : > { %846 = vmatpush3.bf16.msra.mxu0 %v972_v23  ;;  %861 = vmatprep.mubr.msk.bf16.mxu0 %vm1181_vm0, %v1180_v0 }
  0xaa   : > { %847 = vmatprep.subr.bf16.mxu0 %v1180_v0 }
  0xad   : > { %848 = vmatpush3.bf16.msra.mxu0 %v974_v25 }
  0xae   : > { %849 = vmatprep.subr.bf16.mxu0 %v1180_v0 }
  0xb1   : > { %850 = vmatpush3.bf16.msra.mxu0 %v976_v27 }
  0xb2   : > { %851 = vmatprep.subr.bf16.mxu0 %v1180_v0 }
  0xb5   : > { %852 = vmatpush3.bf16.msra.mxu0 %v978_v28 }
  0xb6   : > { %853 = vmatprep.subr.bf16.mxu0 %v1180_v0 }
  0xb9   : > { %854 = vmatpush3.bf16.msra.mxu0 %v980_v29 }
  0xba   : > { %855 = vmatprep.subr.bf16.mxu0 %v1180_v0 }
  0xbd   : > { %856 = vmatpush3.bf16.msra.mxu0 %v982_v30 }
  0xbe   : > { %857 = vmatprep.subr.bf16.mxu0 %v1180_v0 }
  0xc1   : > { %858 = vmatpush3.bf16.msra.mxu0 %v984_v31 }
  0xc2   : > { %859 = vmatprep.subr.bf16.mxu0 %v1180_v0 }
  0xc5   : > { %860 = vmatpush3.bf16.msra.mxu0 %v985_v32 }
  0xc8   : > { %862 = vmatmul.mubr.bf16.vlgmr.msra.gmra.mrb[0].mxu0 %v523_v34 }
 0x17b   : > { %v383_v35 = vpop.f32.mrb[0].mxu1 }
 0x17c   : > { %v823_v36 = vpop.f32.mrb[1].mxu1  ;;  %v384_v40 = vadd.f32 %v749_v39, %v383_v35 }
 0x17d   : > { %v386_v37 = vpop.f32.mrb[2].mxu1 }
 0x17e   : > { %v824_v38 = vpop.f32.mrb[3].mxu1 }
 0x19b   : > { %v607_v41 = vpop.f32.mrb[0].mxu0 }
 0x19c   : > { %v866_v42 = vadd.f32 %v607_v41, %v384_v40  ;;  %v863_v43 = vpop.f32.mrb[1].mxu0 }
 0x19d   : > { %v610_v44 = vpop.f32.mrb[2].mxu0 }
 0x19e   : > { %vm614_vm1 = vcmp.gt.f32.partialorder %v866_v42, 0.0  ;;  %v615_v45 = vmul.f32 0.3, %v866_v42  ;;  %v864_v46 = vpop.f32.mrb[3].mxu0 }
 0x1a0   : > { %v616_v47 = vsel %vm614_vm1, %v866_v42, %v615_v45 }
 0x1a1   : > { %617 = vst [vmem:[%s266_s28] sm:$0xff] %v616_v47 }
 0x1a2   : > { %1088 = shalt.err (!%p1085_p4)
}
 0x1a3   : > { %s1089_s13 = scalar_lea.hbm %s1477_s20, 128  ;;  %s1093_s7 = scalar_lea.hbm %s1534_s4, 256 }
 0x1a4   : > { %p1090_p6 = scmp.ne.s32.totalorder %s1477_s20, %s1089_s13  ;;  %p1094_p12 = scmp.lt.u32.totalorder %s1477_s20, %s1534_s4 }
 0x1a5   : > { %p1095_p5 = scmp.lt.u32.totalorder %s1093_s7, %s1089_s13  ;;  %p1097_p11 = scmp.lt.u32.totalorder %s1089_s13, %s1477_s20 }
 0x1a6   : > { %p1091_p13 = pnand %p1090_p6, %p1562_p0 }
 0x1a7   : > { %p1096_p8 = por %p1095_p5, %p1094_p12 }
 0x1a8   : > { %p1092_p10 = pneg %p1091_p13 }
 0x1a9   : > { %p1098_p1 = por %p1097_p11, %p1096_p8 }
 0x1ab   : > { %p1099_p7 = pnand %p1098_p1, %p1092_p10 }
 0x1ad   : > { %1102 = shalt.err (!%p1099_p7)
}
 0x1ae   : > { %879 = dma.vmem_to_hbm [thread:$0]  (%p1562_p0), %s1479_s22, 128, %s1477_s20, %s619_s2  }
 0x1af PF: > { %s644_s27 = sand.u32 1, %s1161_s18   ;;  %p1563_p2 = scmp.ne.s32.totalorder %s1551_s5, 0 }
 0x1b0   : > { %p1564_p3 = scmp.ge.s32.totalorder %s1173_s21, 2  ;;  %s645_s11 = scalar_lea.sflag [#allocation5], %s644_s27 }
 0x1b2   : > { %p893_p9 = pnand %p1564_p3, %p1563_p2 }
 0x1b4   : > { %1144 = dma.done.wait (!%p893_p9), %s645_s11, 128  }
 0x1b5   : > { %1146 = vsyncadd (!%p893_p9), %s645_s11, 4294967168  ;;  %s1565_s23 = sld [smem:[#allocation14_spill]]  ;;  %s1566_s20 = sld [smem:[#allocation15_spill]] }
 0x1b6   : > { %p20_p0 = scmp.ge.s32.totalorder %s1280_s14, 4   ;;  %s1567_s15 = smov %s1153_s16 }
 0x1b7   : > { %s1568_s16 = smov %s1157_s17  ;;  %s1569_s17 = smov %s1367_s9 }
 0x1b8   : > { %s1570_s18 = smov %s1165_s19  ;;  %s1572_s21 = smov %s1280_s14 }
 0x1b9   :  { %22 = sbr.rel (!%p20_p0) target bundleno = 11 (0xb), region = 100 }
 0x1bb   : > { %s1571_s19 = smov %s1565_s23 }
 0x1c0   :  { %650 = vsyncpa [#allocation4], 1 }
 0x1c1   :  { %652 = vsyncpa [#allocation4 + $0x1], 1 }
 0x1c2   :  { %653 = vsyncpa [#allocation7], 1 }
 0x1c3   :  { %655 = vsyncpa [#allocation7 + $0x1], 1 }
 0x1c4   :  { %656 = vsyncpa [#allocation5], 1 }
 0x1c5   :  { %658 = vsyncpa [#allocation5 + $0x1], 1 }

</bundles_post_ra>
